<compile_context>
chip_gen: v7x
topology: tpu7x:2x2x1
jax: 0.10.0
libtpu: 0.0.40
codegen_flags: <defaults>
</compile_context>

<pallas_src>
import jax
import jax.numpy as jnp
from jax.experimental import pallas as pl
from jax.experimental.pallas import tpu as pltpu


LANE = 128
SUBLANE = 8


def _round_up(n, m):
    return ((n + m - 1) // m) * m


def _make_mlp_kernel(compute_dtype):
    def kernel(x_ref, w1_ref, b1_ref, w2_ref, b2_ref, w3_ref, b3_ref, o_ref):
        # Layer 1: MXU matmul in compute_dtype, f32 accumulation; bias/ReLU in f32 (VPU).
        x = x_ref[...]
        h1 = jnp.dot(x, w1_ref[...], preferred_element_type=jnp.float32) + b1_ref[...]
        h1 = jnp.maximum(h1, 0.0)
        # Layer 2
        h2 = jnp.dot(h1.astype(compute_dtype), w2_ref[...],
                     preferred_element_type=jnp.float32) + b2_ref[...]
        h2 = jnp.maximum(h2, 0.0)
        # Layer 3 (output lanes padded to a multiple of 128 -> lane-dense store)
        out = jnp.dot(h2.astype(compute_dtype), w3_ref[...],
                      preferred_element_type=jnp.float32) + b3_ref[...]
        o_ref[...] = out.astype(o_ref.dtype)
    return kernel


def regenerative_model_forward(x, params, *, compute_dtype=jnp.float32, tile_b=256):
    """Fused 3-layer MLP forward.

    x: [B, input_dim] float32.
    params: dict with w1,b1,w2,b2,w3,b3 (weights stored transposed as [in, out],
            biases as [1, out]).
    compute_dtype: MXU operand dtype (float32 = exact; bfloat16 = fast path,
                   accumulation is always f32).
    tile_b: max batch rows per grid step (adapted down for small batches).
    """
    w1, b1, w2, b2, w3, b3 = (
        params["w1"], params["b1"], params["w2"],
        params["b2"], params["w3"], params["b3"],
    )
    B, in_dim = x.shape
    h1_dim = w1.shape[1]
    h2_dim = w2.shape[1]
    out_dim = w3.shape[1]

    # Pad the output feature dim to a full 128-lane slab (unmasked vst); slice after.
    out_pad = _round_up(out_dim, LANE)
    w3p = jnp.pad(w3, ((0, 0), (0, out_pad - out_dim)))
    b3p = jnp.pad(b3, ((0, 0), (0, out_pad - out_dim)))

    # Batch tiling: tile is a multiple of 8 sublanes, adapted to the batch; pad B to it.
    tile_b = max(SUBLANE, min(tile_b, _round_up(B, SUBLANE)))
    tile_b = _round_up(tile_b, SUBLANE)
    b_pad = _round_up(B, tile_b)
    xp = jnp.pad(x, ((0, b_pad - B), (0, 0))).astype(compute_dtype)

    # Cast weights once in the wrapper (they stay VMEM-resident across the grid).
    w1c = w1.astype(compute_dtype)
    w2c = w2.astype(compute_dtype)
    w3c = w3p.astype(compute_dtype)

    grid = (b_pad // tile_b,)

    flops = 2 * b_pad * (in_dim * h1_dim + h1_dim * h2_dim + h2_dim * out_pad)
    bytes_accessed = (
        xp.size * xp.dtype.itemsize
        + sum(a.size * a.dtype.itemsize for a in (w1c, b1, w2c, b2, w3c, b3p))
        + b_pad * out_pad * x.dtype.itemsize
    )

    out = pl.pallas_call(
        _make_mlp_kernel(compute_dtype),
        out_shape=jax.ShapeDtypeStruct((b_pad, out_pad), x.dtype),
        grid=grid,
        in_specs=[
            # x advances with the batch grid index.
            pl.BlockSpec((tile_b, in_dim), lambda i: (i, 0)),
            # Weights / biases: constant block index -> DMA'd once, VMEM-resident.
            pl.BlockSpec(w1c.shape, lambda i: (0, 0)),
            pl.BlockSpec(b1.shape, lambda i: (0, 0)),
            pl.BlockSpec(w2c.shape, lambda i: (0, 0)),
            pl.BlockSpec(b2.shape, lambda i: (0, 0)),
            pl.BlockSpec(w3c.shape, lambda i: (0, 0)),
            pl.BlockSpec(b3p.shape, lambda i: (0, 0)),
        ],
        out_specs=pl.BlockSpec((tile_b, out_pad), lambda i: (i, 0)),
        compiler_params=pltpu.CompilerParams(
            dimension_semantics=("parallel",),  # batch tiles are independent
        ),
        cost_estimate=pl.CostEstimate(
            flops=flops, transcendentals=0, bytes_accessed=bytes_accessed),
    )(xp, w1c, b1, w2c, b2, w3c, b3p)

    return out[:B, :out_dim]


def init_params(key, input_dim, output_dim):
    """Deterministic init mirroring nn.Linear's uniform(-1/sqrt(fan_in), 1/sqrt(fan_in))."""
    dims = [(input_dim, 128), (128, 64), (64, output_dim)]
    params = {}
    for i, (fan_in, fan_out) in enumerate(dims, start=1):
        key, kw, kb = jax.random.split(key, 3)
        bound = 1.0 / jnp.sqrt(jnp.float32(fan_in))
        # weight stored transposed: [in, out]  (kernel computes x @ W, == PyTorch x @ W.T)
        params[f"w{i}"] = jax.random.uniform(
            kw, (fan_in, fan_out), jnp.float32, -bound, bound)
        # bias kept 2D [1, out] for clean lane-axis broadcasting in-kernel
        params[f"b{i}"] = jax.random.uniform(
            kb, (1, fan_out), jnp.float32, -bound, bound)
    return params


def reference_forward(x, params, compute_dtype=jnp.float32):
    """Pure-JAX reference matching the kernel's mixed-precision scheme."""
    cd = compute_dtype
    h1 = jnp.dot(x.astype(cd), params["w1"].astype(cd),
                 preferred_element_type=jnp.float32) + params["b1"]
    h1 = jnp.maximum(h1, 0.0)
    h2 = jnp.dot(h1.astype(cd), params["w2"].astype(cd),
                 preferred_element_type=jnp.float32) + params["b2"]
    h2 = jnp.maximum(h2, 0.0)
    return jnp.dot(h2.astype(cd), params["w3"].astype(cd),
                   preferred_element_type=jnp.float32) + params["b3"]


if __name__ == "__main__":
    input_dim, output_dim, batch = 32, 16, 8

    key = jax.random.PRNGKey(0)
    key, kx = jax.random.split(key)
    x = jax.random.normal(kx, (batch, input_dim), jnp.float32)
    params = init_params(key, input_dim, output_dim)

    # Exact-precision path (f32 MXU operands) vs strict f32 reference (PyTorch semantics).
    out_f32 = regenerative_model_forward(x, params, compute_dtype=jnp.float32)
    out_f32 = jax.block_until_ready(out_f32)
    ref_f32 = reference_forward(x, params, jnp.float32)
    assert out_f32.shape == (batch, output_dim)
    assert jnp.allclose(out_f32, ref_f32, atol=1e-5, rtol=1e-5)

    # Optional fast path: bf16 MXU operands, f32 accumulation; loose sanity check.
    out_bf16 = regenerative_model_forward(x, params, compute_dtype=jnp.bfloat16)
    out_bf16 = jax.block_until_ready(out_bf16)
    assert out_bf16.shape == (batch, output_dim)
    assert jnp.allclose(out_bf16, ref_f32, atol=5e-2, rtol=5e-2)

    print("KERNEL_OK")
</pallas_src>

<mosaic_0001>
module attributes {stable_mosaic.version = 11 : i64} {
  func.func @kernel(%arg0: i32, %arg1: memref<8x32xf32, #tpu.memory_space<vmem>>, %arg2: memref<32x128xf32, #tpu.memory_space<vmem>>, %arg3: memref<1x128xf32, #tpu.memory_space<vmem>>, %arg4: memref<128x64xf32, #tpu.memory_space<vmem>>, %arg5: memref<1x64xf32, #tpu.memory_space<vmem>>, %arg6: memref<64x128xf32, #tpu.memory_space<vmem>>, %arg7: memref<1x128xf32, #tpu.memory_space<vmem>>, %arg8: memref<8x128xf32, #tpu.memory_space<vmem>>) attributes {dimension_semantics = [#tpu.dimension_semantics<parallel>], iteration_bounds = array<i64: 1>, scalar_prefetch = 0 : i64, scratch_operands = 0 : i64, tpu.core_type = #tpu.core_type<tc>, window_params = [{transform_indices = @transform_0, window_bounds = array<i64: 8, 32>}, {pipeline_mode = #tpu.pipeline_mode<synchronous>, transform_indices = @transform_1, window_bounds = array<i64: 32, 128>}, {pipeline_mode = #tpu.pipeline_mode<synchronous>, transform_indices = @transform_2, window_bounds = array<i64: 1, 128>}, {pipeline_mode = #tpu.pipeline_mode<synchronous>, transform_indices = @transform_3, window_bounds = array<i64: 128, 64>}, {pipeline_mode = #tpu.pipeline_mode<synchronous>, transform_indices = @transform_4, window_bounds = array<i64: 1, 64>}, {pipeline_mode = #tpu.pipeline_mode<synchronous>, transform_indices = @transform_5, window_bounds = array<i64: 64, 128>}, {pipeline_mode = #tpu.pipeline_mode<synchronous>, transform_indices = @transform_6, window_bounds = array<i64: 1, 128>}, {transform_indices = @transform_7, window_bounds = array<i64: 8, 128>}]} {
    %c0 = arith.constant 0 : index
    %c0_0 = arith.constant 0 : index
    %0 = vector.load %arg1[%c0, %c0_0] : memref<8x32xf32, #tpu.memory_space<vmem>>, vector<8x32xf32>
    %c0_1 = arith.constant 0 : index
    %c0_2 = arith.constant 0 : index
    %1 = vector.load %arg2[%c0_1, %c0_2] : memref<32x128xf32, #tpu.memory_space<vmem>>, vector<32x128xf32>
    %cst = arith.constant dense<0.000000e+00> : vector<8x128xf32>
    %2 = tpu.matmul %0, %1, %cst {dimension_numbers = #tpu.dot_dimension_numbers<[1], [0], [0], [1], [0, 0, 1, 1], [], []>} : vector<8x32xf32>, vector<32x128xf32>, vector<8x128xf32> -> vector<8x128xf32>
    %c0_3 = arith.constant 0 : index
    %c0_4 = arith.constant 0 : index
    %3 = vector.load %arg3[%c0_3, %c0_4] : memref<1x128xf32, #tpu.memory_space<vmem>>, vector<1x128xf32>
    %4 = vector.broadcast %3 : vector<1x128xf32> to vector<8x128xf32>
    %5 = arith.addf %2, %4 : vector<8x128xf32>
    %cst_5 = arith.constant 0.000000e+00 : f32
    %6 = vector.broadcast %cst_5 : f32 to vector<8x128xf32>
    %7 = arith.maximumf %5, %6 : vector<8x128xf32>
    %c0_6 = arith.constant 0 : index
    %c0_7 = arith.constant 0 : index
    %8 = vector.load %arg4[%c0_6, %c0_7] : memref<128x64xf32, #tpu.memory_space<vmem>>, vector<128x64xf32>
    %cst_8 = arith.constant dense<0.000000e+00> : vector<8x64xf32>
    %9 = tpu.matmul %7, %8, %cst_8 {dimension_numbers = #tpu.dot_dimension_numbers<[1], [0], [0], [1], [0, 0, 1, 1], [], []>} : vector<8x128xf32>, vector<128x64xf32>, vector<8x64xf32> -> vector<8x64xf32>
    %c0_9 = arith.constant 0 : index
    %c0_10 = arith.constant 0 : index
    %10 = vector.load %arg5[%c0_9, %c0_10] : memref<1x64xf32, #tpu.memory_space<vmem>>, vector<1x64xf32>
    %11 = vector.broadcast %10 : vector<1x64xf32> to vector<8x64xf32>
    %12 = arith.addf %9, %11 : vector<8x64xf32>
    %cst_11 = arith.constant 0.000000e+00 : f32
    %13 = vector.broadcast %cst_11 : f32 to vector<8x64xf32>
    %14 = arith.maximumf %12, %13 : vector<8x64xf32>
    %c0_12 = arith.constant 0 : index
    %c0_13 = arith.constant 0 : index
    %15 = vector.load %arg6[%c0_12, %c0_13] : memref<64x128xf32, #tpu.memory_space<vmem>>, vector<64x128xf32>
    %cst_14 = arith.constant dense<0.000000e+00> : vector<8x128xf32>
    %16 = tpu.matmul %14, %15, %cst_14 {dimension_numbers = #tpu.dot_dimension_numbers<[1], [0], [0], [1], [0, 0, 1, 1], [], []>} : vector<8x64xf32>, vector<64x128xf32>, vector<8x128xf32> -> vector<8x128xf32>
    %c0_15 = arith.constant 0 : index
    %c0_16 = arith.constant 0 : index
    %17 = vector.load %arg7[%c0_15, %c0_16] : memref<1x128xf32, #tpu.memory_space<vmem>>, vector<1x128xf32>
    %18 = vector.broadcast %17 : vector<1x128xf32> to vector<8x128xf32>
    %19 = arith.addf %16, %18 : vector<8x128xf32>
    %c0_17 = arith.constant 0 : index
    %c0_18 = arith.constant 0 : index
    %20 = vector.load %arg8[%c0_17, %c0_18] : memref<8x128xf32, #tpu.memory_space<vmem>>, vector<8x128xf32>
    tpu.vector_store %arg8[%c0_17, %c0_18], %19 {strides = array<i32>} : memref<8x128xf32, #tpu.memory_space<vmem>>, vector<8x128xf32>,
    return
  }
  func.func @transform_0(%arg0: i32) -> (i32, i32) {
    %c0_i32 = arith.constant 0 : i32
    %c0_i32_0 = arith.constant 0 : i32
    return %arg0, %c0_i32 : i32, i32
  }
  func.func @transform_1(%arg0: i32) -> (i32, i32) {
    %c0_i32 = arith.constant 0 : i32
    %c0_i32_0 = arith.constant 0 : i32
    %c0_i32_1 = arith.constant 0 : i32
    return %c0_i32, %c0_i32_0 : i32, i32
  }
  func.func @transform_2(%arg0: i32) -> (i32, i32) {
    %c0_i32 = arith.constant 0 : i32
    %c0_i32_0 = arith.constant 0 : i32
    %c0_i32_1 = arith.constant 0 : i32
    return %c0_i32, %c0_i32_0 : i32, i32
  }
  func.func @transform_3(%arg0: i32) -> (i32, i32) {
    %c0_i32 = arith.constant 0 : i32
    %c0_i32_0 = arith.constant 0 : i32
    %c0_i32_1 = arith.constant 0 : i32
    return %c0_i32, %c0_i32_0 : i32, i32
  }
  func.func @transform_4(%arg0: i32) -> (i32, i32) {
    %c0_i32 = arith.constant 0 : i32
    %c0_i32_0 = arith.constant 0 : i32
    %c0_i32_1 = arith.constant 0 : i32
    return %c0_i32, %c0_i32_0 : i32, i32
  }
  func.func @transform_5(%arg0: i32) -> (i32, i32) {
    %c0_i32 = arith.constant 0 : i32
    %c0_i32_0 = arith.constant 0 : i32
    %c0_i32_1 = arith.constant 0 : i32
    return %c0_i32, %c0_i32_0 : i32, i32
  }
  func.func @transform_6(%arg0: i32) -> (i32, i32) {
    %c0_i32 = arith.constant 0 : i32
    %c0_i32_0 = arith.constant 0 : i32
    %c0_i32_1 = arith.constant 0 : i32
    return %c0_i32, %c0_i32_0 : i32, i32
  }
  func.func @transform_7(%arg0: i32) -> (i32, i32) {
    %c0_i32 = arith.constant 0 : i32
    %c0_i32_0 = arith.constant 0 : i32
    return %arg0, %c0_i32 : i32, i32
  }
}

</mosaic_0001>

<bundles_post_ra>
// kernel: tpu_custom_call.1
= control target key start
LH: loop header
LB: loop body
LE: loop exit
PB: predicated region body
PF: predicated region fallthrough
CT: control target
= control target key end

     0   :  { %v483_v3 = vmov 0.0|0.0   ;;  %vm484_vm0 = vmmov 0   ;;  %v485_v6 = vmov 0.0   ;;  %s652_s0 = inlined_call_operand.vmem [shape: f32[8,32], index: 0, kind: input, shape index: {}]   ;;  %s653_s1 = inlined_call_operand.vmem [shape: f32[32,128], index: 1, kind: input, shape index: {}]   ;;  %s654_s2 = inlined_call_operand.vmem [shape: f32[1,128], index: 2, kind: input, shape index: {}]   ;;  %s655_s3 = inlined_call_operand.vmem [shape: f32[128,64], index: 3, kind: input, shape index: {}]   ;;  %s656_s4 = inlined_call_operand.vmem [shape: f32[1,64], index: 4, kind: input, shape index: {}]   ;;  %s657_s5 = inlined_call_operand.vmem [shape: f32[64,128], index: 5, kind: input, shape index: {}]   ;;  %s658_s6 = inlined_call_operand.vmem [shape: f32[1,128], index: 6, kind: input, shape index: {}]   ;;  %s659_s7 = inlined_call_operand.hbm [shape: f32[8,128], index: 7, kind: output, shape index: {}]  }
   0x1   :  { %v28_v0 = vld [vmem:[%s653_s1] sm:$0xff]  ;;  %v29_v1 = vld [vmem:[%s653_s1 + $0x8] sm:$0xff]  ;;  %v30_v2 = vld [vmem:[%s653_s1 + $0x10] sm:$0xff]  ;;  %413 = vmatprep.subr.bf16.mxu0 %v483_v3  ;;  %356 = vmatprep.mubr.msk.f32.mxu0 %vm484_vm0, %v485_v6 }
   0x2   :  { %v414_v4 = vpack.c.bf16 %v29_v1, %v28_v0  ;;  %v31_v5 = vld [vmem:[%s653_s1 + $0x18] sm:$0xff]  ;;  %v114_v7 = vld [vmem:[%s655_s3] sm:$0xff]  ;;  %419 = vmatprep.subr.bf16.mxu1 %v483_v3  ;;  %v115_v8 = vld [vmem:[%s655_s3 + $0x8] sm:$0xff]  ;;  %391 = vmatprep.mubr.msk.f32.mxu1 %vm484_vm0, %v485_v6 }
   0x3   :  { %v116_v9 = vld [vmem:[%s655_s3 + $0x10] sm:$0xff]  ;;  %v117_v10 = vld [vmem:[%s655_s3 + $0x18] sm:$0xff]  ;;  %v417_v11 = vpack.c.bf16 %v31_v5, %v30_v2  ;;  %v420_v12 = vpack.c.bf16 %v115_v8, %v114_v7  ;;  %v118_v14 = vld [vmem:[%s655_s3 + $0x20] sm:$0xff] }
   0x4   :  { %415 = vmatpush3.bf16.msra.mxu0 %v414_v4  ;;  %v423_v13 = vpack.c.bf16 %v117_v10, %v116_v9  ;;  %v119_v15 = vld [vmem:[%s655_s3 + $0x28] sm:$0xff] }
   0x5   :  { %416 = vmatprep.subr.bf16.mxu0 %v483_v3  ;;  %421 = vmatpush3.bf16.msra.mxu1 %v420_v12 }
   0x6   :  { %422 = vmatprep.subr.bf16.mxu1 %v483_v3 }
   0x7   :  { %12 = vsyncpa [#allocation3], 0  ;;  %v27_v16 = vld [vmem:[%s652_s0] sm:$0xff]  ;;  %vm39_vm1 = vcmask 261120   ;;  %v426_v17 = vpack.c.bf16 %v119_v15, %v118_v14  ;;  %v120_v18 = vld [vmem:[%s655_s3 + $0x30] sm:$0xff]  ;;  %vm223_vm2 = vcmask 523264  }
   0x8   :  { %418 = vmatpush3.bf16.msra.mxu0 %v417_v11  ;;  %v121_v19 = vld [vmem:[%s655_s3 + $0x38] sm:$0xff]  ;;  %v122_v21 = vld [vmem:[%s655_s3 + $0x40] sm:$0xff]  ;;  %v123_v22 = vld [vmem:[%s655_s3 + $0x48] sm:$0xff]  ;;  %s486_s13 = smov [#allocation2]  }
   0x9   :  { %443 = vmatprep.subr.bf16.mxu0 %v483_v3  ;;  %424 = vmatpush3.bf16.msra.mxu1 %v423_v13  ;;  %v429_v20 = vpack.c.bf16 %v121_v19, %v120_v18  ;;  %v432_v23 = vpack.c.bf16 %v123_v22, %v122_v21  ;;  %v124_v24 = vld [vmem:[%s655_s3 + $0x50] sm:$0xff]  ;;  %v125_v25 = vld [vmem:[%s655_s3 + $0x58] sm:$0xff]  ;;  %v126_v27 = vld [vmem:[%s655_s3 + $0x60] sm:$0xff]  ;;  %s304_s14 = sshll.u32 %s486_s13, 4  ;;  %s305_s14 = int_to_ptr.vmem [resolvable:$true] %s304_s14 }
   0xa   :  { %425 = vmatprep.subr.bf16.mxu1 %v483_v3  ;;  %v435_v26 = vpack.c.bf16 %v125_v25, %v124_v24  ;;  %v127_v28 = vld [vmem:[%s655_s3 + $0x68] sm:$0xff]  ;;  %v128_v30 = vld [vmem:[%s655_s3 + $0x70] sm:$0xff]  ;;  %v129_v31 = vld [vmem:[%s655_s3 + $0x78] sm:$0xff]  ;;  %p464_p1 = scmp.lt.s32.totalorder %s305_s14, %s305_s14 }
   0xb   :  { %357 = vmatmul.mubr.msk.f32.vlgmr.msra.gmra.mrb[0].mxu0 %vm39_vm1, %v27_v16  ;;  %v438_v29 = vpack.c.bf16 %v127_v28, %v126_v27  ;;  %v441_v32 = vpack.c.bf16 %v129_v31, %v128_v30  ;;  %v208_v33 = vld [vmem:[%s657_s5] sm:$0xff]  ;;  %v209_v34 = vld [vmem:[%s657_s5 + $0x8] sm:$0xff]  ;;  %v210_v35 = vld [vmem:[%s657_s5 + $0x10] sm:$0xff] }
   0xc   :  { %410 = vmatprep.mubr.msk.f32.mxu0 %vm484_vm0, %v485_v6  ;;  %v444_v36 = vpack.c.bf16 %v209_v34, %v208_v33  ;;  %v211_v37 = vld [vmem:[%s657_s5 + $0x18] sm:$0xff]  ;;  %v212_v39 = vld [vmem:[%s657_s5 + $0x20] sm:$0xff]  ;;  %v213_v40 = vld [vmem:[%s657_s5 + $0x28] sm:$0xff] }
   0xd   :  { %427 = vmatpush3.bf16.msra.mxu1 %v426_v17  ;;  %v447_v38 = vpack.c.bf16 %v211_v37, %v210_v35  ;;  %v450_v41 = vpack.c.bf16 %v213_v40, %v212_v39  ;;  %v312_v42 = vld [vmem:[%s654_s2] ss:$0 sm:$0xff]  ;;  %v214_v47 = vld [vmem:[%s657_s5 + $0x30] sm:$0xff]  ;;  %v215_v48 = vld [vmem:[%s657_s5 + $0x38] sm:$0xff]  ;;  %s459_s5 = scalar_lea.vmem %s305_s14, 128 }
   0xe   :  { %428 = vmatprep.subr.bf16.mxu1 %v483_v3  ;;  %445 = vmatpush3.bf16.msra.mxu0 %v444_v36  ;;  %v453_v49 = vpack.c.bf16 %v215_v48, %v214_v47  ;;  %v314_v50 = vld [vmem:[%s656_s4] ss:$0 sm:$0xff]  ;;  %p460_p0 = scmp.ne.s32.totalorder %s305_s14, %s459_s5  ;;  %p465_p2 = scmp.lt.s32.totalorder %s459_s5, %s459_s5 }
   0xf   :  { %446 = vmatprep.subr.bf16.mxu0 %v483_v3  ;;  %v315_v55 = vld [vmem:[%s658_s6] ss:$0 sm:$0xff] }
  0x10   :  { %p466_p3 = por %p465_p2, %p464_p1 }
  0x11   :  { %430 = vmatpush3.bf16.msra.mxu1 %v429_v20 }
  0x12   :  { %431 = vmatprep.subr.bf16.mxu1 %v483_v3  ;;  %448 = vmatpush3.bf16.msra.mxu0 %v447_v38  ;;  %p467_p4 = pnand %p466_p3, %p460_p0 }
  0x13   :  { %449 = vmatprep.subr.bf16.mxu0 %v483_v3 }
  0x15   :  { %433 = vmatpush3.bf16.msra.mxu1 %v432_v23 }
  0x16   :  { %434 = vmatprep.subr.bf16.mxu1 %v483_v3  ;;  %451 = vmatpush3.bf16.msra.mxu0 %v450_v41 }
  0x17   :  { %452 = vmatprep.subr.bf16.mxu0 %v483_v3 }
  0x19   :  { %436 = vmatpush3.bf16.msra.mxu1 %v435_v26 }
  0x1a   :  { %437 = vmatprep.subr.bf16.mxu1 %v483_v3  ;;  %454 = vmatpush3.bf16.msra.mxu0 %v453_v49 }
  0x1d   :  { %439 = vmatpush3.bf16.msra.mxu1 %v438_v29 }
  0x1e   :  { %440 = vmatprep.subr.bf16.mxu1 %v483_v3 }
  0x21   :  { %442 = vmatpush3.bf16.msra.mxu1 %v441_v32 }
  0xde   :  { %v109_v43 = vpop.f32.mrb[0].mxu0 }
  0xdf   :  { %v110_v44 = vadd.f32 %v312_v42, %v109_v43  ;;  %v358_v45 = vpop.f32.mrb[1].mxu0 }
  0xe1   :  { %v113_v46 = vmax.f32 %v110_v44, 0.0 }
  0xe3   :  { %392 = vmatmul.mubr.f32.vlgmr.msra.gmra.mrb[0].mxu1 %v113_v46 }
 0x1b6   :  { %v203_v51 = vpop.f32.mrb[0].mxu1 }
 0x1b7   :  { %v204_v52 = vadd.f32 %v314_v50, %v203_v51  ;;  %v393_v53 = vpop.f32.mrb[1].mxu1 }
 0x1b9   :  { %v207_v54 = vmax.f32 %v204_v52, 0.0 }
 0x1bb   :  { %411 = vmatmul.mubr.msk.f32.vlgmr.msra.gmra.mrb[2].mxu0 %vm223_vm2, %v207_v54 }
 0x28e   :  { %v293_v56 = vpop.f32.mrb[2].mxu0 }
 0x28f   :  { %v294_v57 = vadd.f32 %v315_v55, %v293_v56  ;;  %v412_v58 = vpop.f32.mrb[3].mxu0 }
 0x291   :  { %297 = vst [vmem:[#allocation2] sm:$0xff] %v294_v57 }
 0x292   :  { %470 = shalt.err (!%p467_p4)
}
 0x293   :  { %s471_s1 = scalar_lea.hbm %s659_s7, 128 }
 0x294   :  { %p472_p5 = scmp.ne.s32.totalorder %s659_s7, %s471_s1  ;;  %p475_p6 = scmp.lt.u32.totalorder %s471_s1, %s659_s7 }
 0x296   :  { %p477_p7 = pnand %p475_p6, %p472_p5 }
 0x298   :  { %480 = shalt.err (!%p477_p7)
}
 0x299   :  { %307 = dma.vmem_to_hbm [thread:$0]  %s305_s14, 128, %s659_s7, [#allocation3]  }
 0x29a   :  { %481 = dma.done.wait [#allocation3], 128  }
 0x29b   :  { %482 = vsyncadd [#allocation3], 4294967168 }
 0x29c   :  { %311 = vsyncpa [#allocation3], 1 }

</bundles_post_ra>
